<compile_context>
chip_gen: v6e
topology: v6e:2x2x1
jax: 0.10.0
libtpu: 0.0.40
codegen_flags: <defaults>
</compile_context>

<pallas_src>
import functools

import jax
import jax.numpy as jnp
from jax.experimental import pallas as pl
from jax.experimental.pallas import tpu as pltpu

LANE = 128
SUBLANE = 8


def _hard_concrete_kernel(x_ref, o_ref, *, loc, inv_temp, gamma, scale):
    x = x_ref[...].astype(jnp.float32)
    # logit(x) = log(x) - log(1 - x); divide by temp folded into inv_temp mul.
    logits = (jnp.log(x) - jnp.log(1.0 - x) + loc) * inv_temp
    s = jax.nn.sigmoid(logits) * scale + gamma
    # hard_sigmoid: clamp to [0, 1] with scalar bounds (no full-tile splats).
    o_ref[...] = jnp.clip(s, 0.0, 1.0).astype(o_ref.dtype)


def hard_concrete(x, loc=0.0, temp=0.1, gamma=-0.1, zeta=1.1, *, block_rows=4096):
    """Elementwise HardConcrete gate. x: any shape, values in (0, 1)."""
    orig_shape = x.shape
    orig_dtype = x.dtype
    n = x.size

    # Flatten to a lane-dense (rows_padded, 128) slab.
    rows = pl.cdiv(n, LANE)
    # Tile rows: multiple of 8 (sublane), capped at block_rows, at least 8.
    tile_rows = min(int(block_rows), pl.cdiv(rows, SUBLANE) * SUBLANE)
    tile_rows = max(SUBLANE, (tile_rows // SUBLANE) * SUBLANE)
    # Pad rows up to a multiple of tile_rows so every grid block is full-size
    # (never fall back to one giant whole-slab tile).
    rows_padded = pl.cdiv(rows, tile_rows) * tile_rows
    total = rows_padded * LANE
    grid = (rows_padded // tile_rows,)

    x_flat = x.reshape(-1)
    if total != n:
        # Pad with 0.5 (logit(0.5) = 0) so log() stays finite on padding lanes;
        # padded lanes are sliced off after the call.
        # TODO(synk): for large unaligned inputs this pad (and the output
        # slice) each cost an extra HBM pass; aligned inputs skip both.
        x_flat = jnp.pad(x_flat, (0, total - n), constant_values=0.5)
    x2d = x_flat.reshape(rows_padded, LANE)

    kernel = functools.partial(
        _hard_concrete_kernel,
        loc=float(loc),
        inv_temp=float(1.0 / temp),
        gamma=float(gamma),
        scale=float(zeta - gamma),
    )

    cost = pl.CostEstimate(
        flops=5 * total,
        transcendentals=4 * total,  # 2x log, exp + reciprocal in sigmoid
        bytes_accessed=2 * 4 * total,
    )

    out2d = pl.pallas_call(
        kernel,
        out_shape=jax.ShapeDtypeStruct((rows_padded, LANE), orig_dtype),
        grid_spec=pltpu.PrefetchScalarGridSpec(
            num_scalar_prefetch=0,
            grid=grid,
            in_specs=[pl.BlockSpec((tile_rows, LANE), lambda i: (i, 0))],
            out_specs=pl.BlockSpec((tile_rows, LANE), lambda i: (i, 0)),
        ),
        compiler_params=pltpu.CompilerParams(
            dimension_semantics=("parallel",),
        ),
        cost_estimate=cost,
    )(x2d)

    out_flat = out2d.reshape(-1)
    if total != n:
        out_flat = out_flat[:n]
    return out_flat.reshape(orig_shape)


def _reference(x, loc=0.0, temp=0.1, gamma=-0.1, zeta=1.1):
    s = jax.nn.sigmoid((jnp.log(x) - jnp.log(1.0 - x) + loc) / temp)
    s = s * (zeta - gamma) + gamma
    return jnp.clip(s, 0.0, 1.0)


if __name__ == "__main__":
    key = jax.random.PRNGKey(0)

    # NCHW input with values in (0, 1), as HardConcrete expects (log(x), log(1-x)).
    x = jax.random.uniform(
        key, (2, 4, 16, 16), dtype=jnp.float32, minval=1e-3, maxval=1.0 - 1e-3
    )
    out = jax.block_until_ready(hard_concrete(x))
    ref = _reference(x)
    assert out.shape == x.shape and out.dtype == x.dtype
    assert jnp.allclose(out, ref, atol=1e-5, rtol=1e-5), "mismatch vs reference (aligned)"

    # Unaligned shape to exercise the padding / slicing path.
    x2 = jax.random.uniform(
        jax.random.PRNGKey(1), (3, 5, 7, 11), dtype=jnp.float32,
        minval=1e-3, maxval=1.0 - 1e-3,
    )
    out2 = jax.block_until_ready(hard_concrete(x2))
    ref2 = _reference(x2)
    assert out2.shape == x2.shape and out2.dtype == x2.dtype
    assert jnp.allclose(out2, ref2, atol=1e-5, rtol=1e-5), "mismatch vs reference (padded)"

    print("KERNEL_OK")
</pallas_src>

<mosaic_0001>
module attributes {stable_mosaic.version = 11 : i64} {
  func.func @_hard_concrete_kernel(%arg0: i32, %arg1: memref<16x128xf32, #tpu.memory_space<vmem>>, %arg2: memref<16x128xf32, #tpu.memory_space<vmem>>) attributes {dimension_semantics = [#tpu.dimension_semantics<parallel>], iteration_bounds = array<i64: 1>, scalar_prefetch = 0 : i64, scratch_operands = 0 : i64, tpu.core_type = #tpu.core_type<tc>, window_params = [{transform_indices = @transform_0, window_bounds = array<i64: 16, 128>}, {transform_indices = @transform_1, window_bounds = array<i64: 16, 128>}]} {
    %c0 = arith.constant 0 : index
    %c0_0 = arith.constant 0 : index
    %0 = vector.load %arg1[%c0, %c0_0] : memref<16x128xf32, #tpu.memory_space<vmem>>, vector<16x128xf32>
    %1 = math.log %0 : vector<16x128xf32>
    %cst = arith.constant 1.000000e+00 : f32
    %2 = vector.broadcast %cst : f32 to vector<16x128xf32>
    %3 = arith.subf %2, %0 : vector<16x128xf32>
    %4 = math.log %3 : vector<16x128xf32>
    %5 = arith.subf %1, %4 : vector<16x128xf32>
    %cst_1 = arith.constant 0.000000e+00 : f32
    %6 = vector.broadcast %cst_1 : f32 to vector<16x128xf32>
    %7 = arith.addf %5, %6 : vector<16x128xf32>
    %cst_2 = arith.constant 1.000000e+01 : f32
    %8 = vector.broadcast %cst_2 : f32 to vector<16x128xf32>
    %9 = arith.mulf %7, %8 : vector<16x128xf32>
    %10 = arith.negf %9 : vector<16x128xf32>
    %11 = math.exp %10 : vector<16x128xf32>
    %cst_3 = arith.constant 1.000000e+00 : f32
    %12 = vector.broadcast %cst_3 : f32 to vector<16x128xf32>
    %13 = arith.addf %12, %11 : vector<16x128xf32>
    %14 = arith.divf %12, %13 : vector<16x128xf32>
    %cst_4 = arith.constant 1.200000e+00 : f32
    %15 = vector.broadcast %cst_4 : f32 to vector<16x128xf32>
    %16 = arith.mulf %14, %15 : vector<16x128xf32>
    %cst_5 = arith.constant -1.000000e-01 : f32
    %17 = vector.broadcast %cst_5 : f32 to vector<16x128xf32>
    %18 = arith.addf %16, %17 : vector<16x128xf32>
    %cst_6 = arith.constant 0.000000e+00 : f32
    %cst_7 = arith.constant 1.000000e+00 : f32
    %19 = vector.broadcast %cst_6 : f32 to vector<16x128xf32>
    %20 = arith.maximumf %19, %18 : vector<16x128xf32>
    %21 = vector.broadcast %cst_7 : f32 to vector<16x128xf32>
    %22 = arith.minimumf %21, %20 : vector<16x128xf32>
    %c0_8 = arith.constant 0 : index
    %c0_9 = arith.constant 0 : index
    %23 = vector.load %arg2[%c0_8, %c0_9] : memref<16x128xf32, #tpu.memory_space<vmem>>, vector<16x128xf32>
    tpu.vector_store %arg2[%c0_8, %c0_9], %22 {strides = array<i32>} : memref<16x128xf32, #tpu.memory_space<vmem>>, vector<16x128xf32>,
    return
  }
  func.func @transform_0(%arg0: i32) -> (i32, i32) {
    %c0_i32 = arith.constant 0 : i32
    %c0_i32_0 = arith.constant 0 : i32
    return %arg0, %c0_i32 : i32, i32
  }
  func.func @transform_1(%arg0: i32) -> (i32, i32) {
    %c0_i32 = arith.constant 0 : i32
    %c0_i32_0 = arith.constant 0 : i32
    return %arg0, %c0_i32 : i32, i32
  }
}

</mosaic_0001>

<bundles_post_ra>
// kernel: tpu_custom_call.1
= control target key start
LH: loop header
LB: loop body
LE: loop exit
PB: predicated region body
PF: predicated region fallthrough
CT: control target
= control target key end

     0   :  { %6 = vsyncpa [#allocation3], 0  ;;  %s172_s0 = inlined_call_operand.hbm [shape: f32[16,128], index: 0, kind: input, shape index: {}]   ;;  %s173_s1 = inlined_call_operand.hbm [shape: f32[16,128], index: 1, kind: output, shape index: {}]  }
   0x1   :  { %7 = vsyncpa [#allocation4], 0  ;;  %s146_s6 = smov [#allocation2]  }
   0x2   :  { %s13_s7 = sshll.u32 %s146_s6, 4  ;;  %s14_s7 = int_to_ptr.vmem [resolvable:$true] %s13_s7 }
   0x3   :  { %s110_s8 = scalar_lea.vmem %s14_s7, 256  ;;  %p115_p1 = scmp.lt.s32.totalorder %s14_s7, %s14_s7 }
   0x4   :  { %p111_p0 = scmp.ne.s32.totalorder %s14_s7, %s110_s8  ;;  %p116_p2 = scmp.lt.s32.totalorder %s110_s8, %s110_s8 }
   0x6   :  { %p117_p3 = por %p116_p2, %p115_p1 }
   0x8   :  { %p118_p4 = pnand %p117_p3, %p111_p0 }
   0xa   :  { %121 = shalt.err (!%p118_p4)
}
   0xb   :  { %s147_s9 = smov 128   ;;  %s148_s10 = smov 8  }
   0xc   :  { %19 = dma.hbm_to_vmem [thread:$0]  %s172_s0, 256, %s14_s7, [#allocation3], %s147_s9, %s147_s9, %s148_s10  }
   0xd   :  { %142 = dma.done.wait [#allocation3], 256  }
   0xe   :  { %143 = vsyncadd [#allocation3], 4294967040  ;;  %v23_v0 = vld [vmem:[#allocation2] sm:$0xff]  ;;  %v24_v1 = vld [vmem:[#allocation2 + $0x8] sm:$0xff]  ;;  %s149_s0 = smov [#allocation5]  }
   0xf   :  { %86 = vlog2.f32 %v23_v0  ;;  %v29_v2 = vsub.f32 1.0, %v23_v0  ;;  %v30_v3 = vsub.f32 1.0, %v24_v1  ;;  %s68_s13 = sshll.u32 %s149_s0, 4  ;;  %s69_s13 = int_to_ptr.vmem [resolvable:$true] %s68_s13 }
  0x10   :  { %88 = vlog2.f32 %v24_v1  ;;  %s122_s14 = scalar_lea.vmem %s69_s13, 256  ;;  %p127_p6 = scmp.lt.s32.totalorder %s69_s13, %s69_s13 }
  0x11   :  { %90 = vlog2.f32 %v29_v2  ;;  %p123_p5 = scmp.ne.s32.totalorder %s69_s13, %s122_s14  ;;  %p128_p7 = scmp.lt.s32.totalorder %s122_s14, %s122_s14 }
  0x12   :  { %92 = vlog2.f32 %v30_v3 }
  0x13   :  { %p129_p8 = por %p128_p7, %p127_p6 }
  0x15   :  { %p130_p9 = pnand %p129_p8, %p123_p5 }
  0x1c   :  { %v87_v4 = vpop.eup %86 }
  0x1d   :  { %v89_v5 = vpop.eup %88  ;;  %v26_v6 = vmul.f32 0.6931472, %v87_v4 }
  0x1e   :  { %v91_v7 = vpop.eup %90  ;;  %v28_v8 = vmul.f32 0.6931472, %v89_v5 }
  0x1f   :  { %v93_v9 = vpop.eup %92  ;;  %v32_v10 = vmul.f32 0.6931472, %v91_v7 }
  0x20   :  { %v34_v11 = vmul.f32 0.6931472, %v93_v9 }
  0x21   :  { %v35_v12 = vsub.f32 %v26_v6, %v32_v10 }
  0x22   :  { %v36_v13 = vsub.f32 %v28_v8, %v34_v11 }
  0x23   :  { %v80_v14 = vmul.f32 -10.0, %v35_v12 }
  0x24   :  { %v81_v15 = vmul.f32 -10.0, %v36_v13 }
  0x25   :  { %v43_v16 = vmul.f32 1.442695, %v80_v14 }
  0x26   :  { %v45_v17 = vmul.f32 1.442695, %v81_v15 }
  0x27   :  { %94 = vpow2.f32 %v43_v16 }
  0x28   :  { %96 = vpow2.f32 %v45_v17 }
  0x34   :  { %v95_v18 = vpop.eup %94 }
  0x35   :  { %v97_v19 = vpop.eup %96  ;;  %v47_v20 = vadd.f32 1.0, %v95_v18 }
  0x36   :  { %v48_v21 = vadd.f32 1.0, %v97_v19 }
  0x37   :  { %98 = vrcp.f32 %v47_v20 }
  0x38   :  { %100 = vrcp.f32 %v48_v21 }
  0x44   :  { %v99_v22 = vpop.eup %98 }
  0x45   :  { %v101_v23 = vpop.eup %100  ;;  %v53_v24 = vmul.f32 1.2, %v99_v22 }
  0x46   :  { %v54_v25 = vmul.f32 1.2, %v101_v23 }
  0x47   :  { %v55_v26 = vadd.f32 -0.1, %v53_v24 }
  0x48   :  { %v56_v27 = vadd.f32 -0.1, %v54_v25 }
  0x49   :  { %v57_v28 = vmax.f32 %v55_v26, 0.0 }
  0x4a   :  { %v58_v29 = vmax.f32 %v56_v27, 0.0 }
  0x4b   :  { %v59_v30 = vmin.f32 %v57_v28, 1.0 }
  0x4c   :  { %v60_v31 = vmin.f32 %v58_v29, 1.0 }
  0x4d   :  { %61 = vst [vmem:[#allocation5] sm:$0xff] %v59_v30 }
  0x4e   :  { %62 = vst [vmem:[#allocation5 + $0x8] sm:$0xff] %v60_v31 }
  0x4f   :  { %133 = shalt.err (!%p130_p9)
}
  0x50   :  { %74 = dma.vmem_to_hbm [thread:$0]  %s69_s13, 256, %s173_s1, [#allocation4], %s147_s9, %s147_s9, %s148_s10  }
  0x51   :  { %144 = dma.done.wait [#allocation4], 256  }
  0x52   :  { %145 = vsyncadd [#allocation4], 4294967040 }
  0x53   :  { %78 = vsyncpa [#allocation3], 1 }
  0x54   :  { %79 = vsyncpa [#allocation4], 1 }

</bundles_post_ra>
